<compile_context>
chip_gen: v5e
topology: v5e:2x2
jax: 0.10.0
libtpu: 0.0.40
codegen_flags: <defaults>
</compile_context>

<pallas_src>
import jax
import jax.numpy as jnp
from jax.experimental import pallas as pl
from jax.experimental.pallas import tpu as pltpu


def _round_up(n: int, m: int) -> int:
    return ((n + m - 1) // m) * m


def _ffn_kernel(x_ref, w1_ref, b1_ref, w2_ref, b2_ref, o_ref, acc_ref):
    # x_ref:  (tm, d_model)   w1_ref: (d_model, tff)   b1_ref: (1, tff)   [f32]
    # w2_ref: (tff, d_model)  b2_ref: (1, d_model)     o_ref:  (tm, d_model)
    # acc_ref: (tm, d_model) f32 scratch accumulator across the d_ff grid axis.
    k = pl.program_id(1)

    # h_k = relu(x @ W1[:, chunk k] + b1[chunk k]) in f32.
    h = jnp.dot(x_ref[...], w1_ref[...], preferred_element_type=jnp.float32)
    h = jnp.maximum(h + b1_ref[...], 0.0)

    # partial_k = h_k @ W2[chunk k, :] in f32.
    partial = jnp.dot(h.astype(w2_ref.dtype), w2_ref[...],
                      preferred_element_type=jnp.float32)

    @pl.when(k == 0)
    def _init_with_first():
        acc_ref[...] = partial          # init merged with first accumulation

    @pl.when(k > 0)
    def _accumulate():
        acc_ref[...] += partial

    @pl.when(k == pl.num_programs(1) - 1)
    def _finalize():
        o_ref[...] = (acc_ref[...] + b2_ref[...]).astype(o_ref.dtype)


def _tpu_config():
    """Per-generation tile sizes, VMEM cap and pipeline depths."""
    kind = ""
    try:
        kind = jax.devices()[0].device_kind.lower()
    except Exception:
        pass
    if "v7" in kind:
        # 64 MiB VMEM/TC, ~3.2 TB/s HBM: needs tm >= ~620 to be MXU-bound, but
        # VMEM-capped -> single-buffer x/out (they only change with i) to fit.
        return dict(gen="v7", tm=768, tff=256, vmem_cap=52 << 20,
                    w_buf=2, io_buf=1)
    if "v6" in kind:
        # 128 MiB VMEM, ~650 FLOP/byte balance point -> tm >= 768, big tff to
        # halve the accumulator read-modify-write passes per row tile.
        return dict(gen="v6", tm=768, tff=1024, vmem_cap=104 << 20,
                    w_buf=2, io_buf=2)
    if "v5" in kind:
        # ~240 FLOP/byte balance point; Buffered(3) weights hide DMA jitter.
        return dict(gen="v5", tm=512, tff=512, vmem_cap=104 << 20,
                    w_buf=3, io_buf=2)
    # Unknown part: conservative, fits any generation.
    return dict(gen="unknown", tm=512, tff=512, vmem_cap=48 << 20,
                w_buf=2, io_buf=2)


def prepare_ffn_params(w1, b1, w2, b2, compute_dtype=jnp.bfloat16):
    """Pre-transpose & cast nn.Linear weights ONCE, outside the hot path.

    w1: (d_ff, d_model), w2: (d_model, d_ff) in PyTorch nn.Linear layout.
    Returns (W1^T bf16, b1 f32 (1,d_ff), W2^T bf16, b2 f32 (1,d_model)).
    """
    d_ff, d_model = w1.shape
    w1_t = jnp.asarray(w1).T.astype(compute_dtype)            # (d_model, d_ff)
    w2_t = jnp.asarray(w2).T.astype(compute_dtype)            # (d_ff, d_model)
    b1_2d = jnp.asarray(b1, dtype=jnp.float32).reshape(1, d_ff)
    b2_2d = jnp.asarray(b2, dtype=jnp.float32).reshape(1, d_model)
    return w1_t, b1_2d, w2_t, b2_2d


def feed_forward_prepared(x, params, *, tm=None, tff=None,
                          compute_dtype=jnp.bfloat16, out_dtype=None):
    """x: (batch, seq, d_model); params from prepare_ffn_params.

    tm/tff default to per-generation roofline-sized values; out_dtype defaults
    to x.dtype (pass jnp.bfloat16 to halve output VMEM/HBM traffic if the
    surrounding model is bf16).
    """
    w1_t, b1_2d, w2_t, b2_2d = params
    B, S, d_model = x.shape
    d_ff = w1_t.shape[1]
    M = B * S
    out_dtype = x.dtype if out_dtype is None else out_dtype

    cfg = _tpu_config()
    tm = cfg["tm"] if tm is None else tm
    tff = cfg["tff"] if tff is None else tff

    # ---- tile selection: MXU/lane aligned, clamped to the problem size ----
    # v6e/v7x have a 256-wide MXU: don't leave it half-filled for mid-size M.
    m_align = 256 if (cfg["gen"] in ("v6", "v7") and M >= 256) else 128
    tm_eff = min(tm, _round_up(M, m_align))
    tff_eff = min(tff, _round_up(d_ff, 128))
    M_pad = _round_up(M, tm_eff)
    dff_pad = _round_up(d_ff, tff_eff)

    x2d = x.reshape(M, d_model).astype(compute_dtype)
    if M_pad != M:
        x2d = jnp.pad(x2d, ((0, M_pad - M), (0, 0)))
    if dff_pad != d_ff:
        # Zero-padding d_ff is exact: relu(0 + 0) * 0 contributes nothing.
        w1_t = jnp.pad(w1_t, ((0, 0), (0, dff_pad - d_ff)))
        b1_2d = jnp.pad(b1_2d, ((0, 0), (0, dff_pad - d_ff)))
        w2_t = jnp.pad(w2_t, ((0, dff_pad - d_ff), (0, 0)))

    grid = (M_pad // tm_eff, dff_pad // tff_eff)

    # ---- VMEM budget: actual buffer counts, per-generation physical cap ----
    eb = jnp.dtype(compute_dtype).itemsize
    ob = jnp.dtype(out_dtype).itemsize
    w_buf, io_buf = cfg["w_buf"], cfg["io_buf"]
    est = (io_buf * tm_eff * d_model * eb           # x tiles
           + w_buf * d_model * tff_eff * eb         # W1^T tiles
           + w_buf * tff_eff * d_model * eb         # W2^T tiles
           + 2 * (tff_eff + d_model) * 4            # bias tiles (f32)
           + io_buf * tm_eff * d_model * ob         # out tiles
           + tm_eff * d_model * 4                   # f32 accumulator scratch
           + tm_eff * tff_eff * (4 + eb))           # h (f32) + bf16 cast scratch
    vmem_limit = int(min(max(est + (8 << 20), 32 << 20), cfg["vmem_cap"]))

    def _spec(shape, index_map, bufs):
        if bufs == 2:                                # default pipelining depth
            return pl.BlockSpec(shape, index_map)
        return pl.BlockSpec(shape, index_map, pipeline_mode=pl.Buffered(bufs))

    out = pl.pallas_call(
        _ffn_kernel,
        out_shape=jax.ShapeDtypeStruct((M_pad, d_model), out_dtype),
        grid_spec=pltpu.PrefetchScalarGridSpec(
            num_scalar_prefetch=0,
            grid=grid,
            in_specs=[
                _spec((tm_eff, d_model), lambda i, k: (i, 0), io_buf),   # x rows
                _spec((d_model, tff_eff), lambda i, k: (0, k), w_buf),   # W1^T
                pl.BlockSpec((1, tff_eff), lambda i, k: (0, k)),         # b1
                _spec((tff_eff, d_model), lambda i, k: (k, 0), w_buf),   # W2^T
                pl.BlockSpec((1, d_model), lambda i, k: (0, 0)),         # b2
            ],
            out_specs=_spec((tm_eff, d_model), lambda i, k: (i, 0), io_buf),
            scratch_shapes=[pltpu.VMEM((tm_eff, d_model), jnp.float32)],
        ),
        compiler_params=pltpu.CompilerParams(
            dimension_semantics=("parallel", "arbitrary"),
            vmem_limit_bytes=vmem_limit),
    )(x2d, w1_t, b1_2d, w2_t, b2_2d)

    return out[:M].reshape(B, S, d_model)


def feed_forward(x, w1, b1, w2, b2, *, tm=None, tff=None,
                 compute_dtype=jnp.bfloat16, out_dtype=None):
    """Convenience wrapper: PyTorch-layout weights, transposed/cast per call.
    For repeated calls, use prepare_ffn_params + feed_forward_prepared."""
    params = prepare_ffn_params(w1, b1, w2, b2, compute_dtype)
    return feed_forward_prepared(x, params, tm=tm, tff=tff,
                                 compute_dtype=compute_dtype,
                                 out_dtype=out_dtype)


if __name__ == "__main__":
    # Small shapes consistent with the module: batch=2, seq=8, d_model=32, d_ff=64
    batch, seq, d_model, d_ff = 2, 8, 32, 64
    key = jax.random.PRNGKey(0)
    kx, kw1, kb1, kw2, kb2 = jax.random.split(key, 5)

    x = jax.random.normal(kx, (batch, seq, d_model), dtype=jnp.float32)

    # Deterministic parameter init (mimics nn.Linear uniform(-1/sqrt(fan_in), .))
    bound1 = 1.0 / (d_model ** 0.5)
    w1 = jax.random.uniform(kw1, (d_ff, d_model), jnp.float32, -bound1, bound1)
    b1 = jax.random.uniform(kb1, (d_ff,), jnp.float32, -bound1, bound1)
    bound2 = 1.0 / (d_ff ** 0.5)
    w2 = jax.random.uniform(kw2, (d_model, d_ff), jnp.float32, -bound2, bound2)
    b2 = jax.random.uniform(kb2, (d_model,), jnp.float32, -bound2, bound2)

    # Pre-transpose / cast weights once, outside the hot path.
    params = prepare_ffn_params(w1, b1, w2, b2)

    y = feed_forward_prepared(x, params)
    jax.block_until_ready(y)

    # Pure-JAX f32 reference. Kernel uses bf16 operands with f32 accumulation,
    # so allow bf16-level tolerance.
    ref = jnp.maximum(x @ w1.T + b1, 0.0) @ w2.T + b2
    assert y.shape == x.shape
    err = float(jnp.max(jnp.abs(y - ref)))
    assert jnp.allclose(y, ref, atol=5e-2, rtol=5e-2), f"max abs err {err}"

    print("KERNEL_OK")
</pallas_src>

<mosaic_0001>
module attributes {stable_mosaic.version = 11 : i64} {
  func.func @_ffn_kernel(%arg0: i32, %arg1: i32, %arg2: memref<128x32xbf16, #tpu.memory_space<vmem>>, %arg3: memref<32x128xbf16, #tpu.memory_space<vmem>>, %arg4: memref<1x128xf32, #tpu.memory_space<vmem>>, %arg5: memref<128x32xbf16, #tpu.memory_space<vmem>>, %arg6: memref<1x32xf32, #tpu.memory_space<vmem>>, %arg7: memref<128x32xf32, #tpu.memory_space<vmem>>, %arg8: memref<128x32xf32, #tpu.memory_space<vmem>>) attributes {dimension_semantics = [#tpu.dimension_semantics<parallel>, #tpu.dimension_semantics<arbitrary>], iteration_bounds = array<i64: 1, 1>, scalar_prefetch = 0 : i64, scratch_operands = 1 : i64, tpu.core_type = #tpu.core_type<tc>, window_params = [{transform_indices = @transform_0, window_bounds = array<i64: 128, 32>}, {transform_indices = @transform_1, window_bounds = array<i64: 32, 128>}, {transform_indices = @transform_2, window_bounds = array<i64: 1, 128>}, {transform_indices = @transform_3, window_bounds = array<i64: 128, 32>}, {pipeline_mode = #tpu.pipeline_mode<synchronous>, transform_indices = @transform_4, window_bounds = array<i64: 1, 32>}, {transform_indices = @transform_5, window_bounds = array<i64: 128, 32>}]} {
    %c0 = arith.constant 0 : index
    %c0_0 = arith.constant 0 : index
    %0 = vector.load %arg2[%c0, %c0_0] : memref<128x32xbf16, #tpu.memory_space<vmem>>, vector<128x32xbf16>
    %c0_1 = arith.constant 0 : index
    %c0_2 = arith.constant 0 : index
    %1 = vector.load %arg3[%c0_1, %c0_2] : memref<32x128xbf16, #tpu.memory_space<vmem>>, vector<32x128xbf16>
    %cst = arith.constant dense<0.000000e+00> : vector<128x128xf32>
    %2 = tpu.matmul %0, %1, %cst {dimension_numbers = #tpu.dot_dimension_numbers<[1], [0], [0], [1], [0, 0, 1, 1], [], []>} : vector<128x32xbf16>, vector<32x128xbf16>, vector<128x128xf32> -> vector<128x128xf32>
    %c0_3 = arith.constant 0 : index
    %c0_4 = arith.constant 0 : index
    %3 = vector.load %arg4[%c0_3, %c0_4] : memref<1x128xf32, #tpu.memory_space<vmem>>, vector<1x128xf32>
    %4 = vector.broadcast %3 : vector<1x128xf32> to vector<128x128xf32>
    %5 = arith.addf %2, %4 : vector<128x128xf32>
    %cst_5 = arith.constant 0.000000e+00 : f32
    %6 = vector.broadcast %cst_5 : f32 to vector<128x128xf32>
    %7 = arith.maximumf %5, %6 : vector<128x128xf32>
    %8 = arith.truncf %7 : vector<128x128xf32> to vector<128x128xbf16>
    %c0_6 = arith.constant 0 : index
    %c0_7 = arith.constant 0 : index
    %9 = vector.load %arg5[%c0_6, %c0_7] : memref<128x32xbf16, #tpu.memory_space<vmem>>, vector<128x32xbf16>
    %cst_8 = arith.constant dense<0.000000e+00> : vector<128x32xf32>
    %10 = tpu.matmul %8, %9, %cst_8 {dimension_numbers = #tpu.dot_dimension_numbers<[1], [0], [0], [1], [0, 0, 1, 1], [], []>} : vector<128x128xbf16>, vector<128x32xbf16>, vector<128x32xf32> -> vector<128x32xf32>
    %c0_i32 = arith.constant 0 : i32
    %11 = arith.cmpi eq, %arg1, %c0_i32 : i32
    %12 = arith.extui %11 : i1 to i32
    %c0_i32_9 = arith.constant 0 : i32
    %13 = arith.cmpi ne, %12, %c0_i32_9 : i32
    scf.if %13 {
      %c0_14 = arith.constant 0 : index
      %c0_15 = arith.constant 0 : index
      %20 = vector.load %arg8[%c0_14, %c0_15] : memref<128x32xf32, #tpu.memory_space<vmem>>, vector<128x32xf32>
      tpu.vector_store %arg8[%c0_14, %c0_15], %10 {strides = array<i32>} : memref<128x32xf32, #tpu.memory_space<vmem>>, vector<128x32xf32>,
    } else {
    }
    %c0_i32_10 = arith.constant 0 : i32
    %14 = arith.cmpi sgt, %arg1, %c0_i32_10 : i32
    %15 = arith.extui %14 : i1 to i32
    %c0_i32_11 = arith.constant 0 : i32
    %16 = arith.cmpi ne, %15, %c0_i32_11 : i32
    scf.if %16 {
      %c0_14 = arith.constant 0 : index
      %c0_15 = arith.constant 0 : index
      %20 = vector.load %arg8[%c0_14, %c0_15] : memref<128x32xf32, #tpu.memory_space<vmem>>, vector<128x32xf32>
      %21 = arith.addf %20, %10 : vector<128x32xf32>
      %c0_16 = arith.constant 0 : index
      %c0_17 = arith.constant 0 : index
      %22 = vector.load %arg8[%c0_16, %c0_17] : memref<128x32xf32, #tpu.memory_space<vmem>>, vector<128x32xf32>
      tpu.vector_store %arg8[%c0_16, %c0_17], %21 {strides = array<i32>} : memref<128x32xf32, #tpu.memory_space<vmem>>, vector<128x32xf32>,
    } else {
    }
    %c0_i32_12 = arith.constant 0 : i32
    %17 = arith.cmpi eq, %arg1, %c0_i32_12 : i32
    %18 = arith.extui %17 : i1 to i32
    %c0_i32_13 = arith.constant 0 : i32
    %19 = arith.cmpi ne, %18, %c0_i32_13 : i32
    scf.if %19 {
      %c0_14 = arith.constant 0 : index
      %c0_15 = arith.constant 0 : index
      %20 = vector.load %arg8[%c0_14, %c0_15] : memref<128x32xf32, #tpu.memory_space<vmem>>, vector<128x32xf32>
      %c0_16 = arith.constant 0 : index
      %c0_17 = arith.constant 0 : index
      %21 = vector.load %arg6[%c0_16, %c0_17] : memref<1x32xf32, #tpu.memory_space<vmem>>, vector<1x32xf32>
      %22 = vector.broadcast %21 : vector<1x32xf32> to vector<128x32xf32>
      %23 = arith.addf %20, %22 : vector<128x32xf32>
      %c0_18 = arith.constant 0 : index
      %c0_19 = arith.constant 0 : index
      %24 = vector.load %arg7[%c0_18, %c0_19] : memref<128x32xf32, #tpu.memory_space<vmem>>, vector<128x32xf32>
      tpu.vector_store %arg7[%c0_18, %c0_19], %23 {strides = array<i32>} : memref<128x32xf32, #tpu.memory_space<vmem>>, vector<128x32xf32>,
    } else {
    }
    return
  }
  func.func @transform_0(%arg0: i32, %arg1: i32) -> (i32, i32) {
    %c0_i32 = arith.constant 0 : i32
    %c0_i32_0 = arith.constant 0 : i32
    return %arg0, %c0_i32 : i32, i32
  }
  func.func @transform_1(%arg0: i32, %arg1: i32) -> (i32, i32) {
    %c0_i32 = arith.constant 0 : i32
    %c0_i32_0 = arith.constant 0 : i32
    return %c0_i32, %arg1 : i32, i32
  }
  func.func @transform_2(%arg0: i32, %arg1: i32) -> (i32, i32) {
    %c0_i32 = arith.constant 0 : i32
    %c0_i32_0 = arith.constant 0 : i32
    return %c0_i32, %arg1 : i32, i32
  }
  func.func @transform_3(%arg0: i32, %arg1: i32) -> (i32, i32) {
    %c0_i32 = arith.constant 0 : i32
    %c0_i32_0 = arith.constant 0 : i32
    return %arg1, %c0_i32 : i32, i32
  }
  func.func @transform_4(%arg0: i32, %arg1: i32) -> (i32, i32) {
    %c0_i32 = arith.constant 0 : i32
    %c0_i32_0 = arith.constant 0 : i32
    %c0_i32_1 = arith.constant 0 : i32
    return %c0_i32, %c0_i32_0 : i32, i32
  }
  func.func @transform_5(%arg0: i32, %arg1: i32) -> (i32, i32) {
    %c0_i32 = arith.constant 0 : i32
    %c0_i32_0 = arith.constant 0 : i32
    return %arg0, %c0_i32 : i32, i32
  }
}

</mosaic_0001>

<bundles_post_ra>
// kernel: tpu_custom_call.1
= control target key start
LH: loop header
LB: loop body
LE: loop exit
PB: predicated region body
PF: predicated region fallthrough
CT: control target
= control target key end

     0   :  { %vm97_vm0 = vcmask 261120   ;;  %s745_s1 = inlined_call_operand.vmem [shape: bf16[32,128], index: 1, kind: input, shape index: {}]   ;;  %s746_s2 = inlined_call_operand.vmem [shape: f32[1,128], index: 2, kind: input, shape index: {}]   ;;  %s747_s0 = inlined_call_operand.vmem [shape: bf16[128,32], index: 0, kind: input, shape index: {}]   ;;  %s748_s3 = inlined_call_operand.vmem [shape: bf16[128,32], index: 3, kind: input, shape index: {}]   ;;  %s749_s4 = inlined_call_operand.vmem [shape: f32[1,32], index: 4, kind: input, shape index: {}]   ;;  %s750_s5 = inlined_call_operand.vmem [shape: f32[128,32], index: 5, kind: output, shape index: {}]  }
   0x1   :  { %v528_v0 = vld [vmem:[%s745_s1 + $0x8] sm:$0xff]  ;;  %v527_v1 = vld [vmem:[%s745_s1] sm:$0xff]  ;;  %v521_v4 = vld [vmem:[%s747_s0 + $0x10] sm:$0xff] }
   0x2   :  { %128 = vmatpush.bf16.msra.mxu0 %v528_v0  ;;  %537 = vmatpush.bf16.msra.mxu3 %v528_v0  ;;  %v519_v2 = vld [vmem:[%s747_s0] sm:$0xff]  ;;  %v520_v3 = vld [vmem:[%s747_s0 + $0x8] sm:$0xff]  ;;  %v536_v6 = vld [vmem:[%s748_s3 + $0x38] sm:$0xff] }
   0x3   :  { %v524_v5 = vld [vmem:[%s747_s0 + $0x28] sm:$0xff]  ;;  %259 = vmatpush.bf16.msra.mxu1 %v536_v6  ;;  %v535_v7 = vld [vmem:[%s748_s3 + $0x30] sm:$0xff]  ;;  %539 = vmatpush.bf16.msra.mxu2 %v536_v6  ;;  %v522_v9 = vld [vmem:[%s747_s0 + $0x18] sm:$0xff] }
   0x4   :  { %v534_v8 = vld [vmem:[%s748_s3 + $0x28] sm:$0xff]  ;;  %v533_v10 = vld [vmem:[%s748_s3 + $0x20] sm:$0xff]  ;;  %v525_v11 = vld [vmem:[%s747_s0 + $0x30] sm:$0xff] }
   0x5   :  { %v523_v12 = vld [vmem:[%s747_s0 + $0x20] sm:$0xff]  ;;  %v526_v13 = vld [vmem:[%s747_s0 + $0x38] sm:$0xff]  ;;  %v531_v15 = vld [vmem:[%s748_s3 + $0x10] sm:$0xff] }
   0x6   :  { %129 = vmatpush.bf16.msra.mxu0 %v527_v1  ;;  %538 = vmatpush.bf16.msra.mxu3 %v527_v1  ;;  %v532_v14 = vld [vmem:[%s748_s3 + $0x18] sm:$0xff]  ;;  %v530_v16 = vld [vmem:[%s748_s3 + $0x8] sm:$0xff]  ;;  %v529_v17 = vld [vmem:[%s748_s3] sm:$0xff] }
   0x7   :  { %260 = vmatpush.bf16.msra.mxu1 %v535_v7  ;;  %540 = vmatpush.bf16.msra.mxu2 %v535_v7  ;;  %v547_v19 = vld [vmem:[%s746_s2] ss:$0 sm:$0xff] }
   0x9   :  { %479 = vmatmul.msk.bf16.vlgmr.msra.gmra.mxu0 %vm97_vm0, %v519_v2  ;;  %484 = vmatmul.msk.bf16.vlgmr.msra.gmra.mxu3 %vm97_vm0, %v524_v5 }
   0xb   :  { %261 = vmatpush.bf16.msra.mxu1 %v534_v8  ;;  %541 = vmatpush.bf16.msra.mxu2 %v534_v8 }
   0xf   :  { %262 = vmatpush.bf16.msra.mxu1 %v533_v10  ;;  %542 = vmatpush.bf16.msra.mxu2 %v533_v10 }
  0x13   :  { %263 = vmatpush.bf16.msra.mxu1 %v532_v14  ;;  %543 = vmatpush.bf16.msra.mxu2 %v532_v14 }
  0x17   :  { %264 = vmatpush.bf16.msra.mxu1 %v531_v15  ;;  %544 = vmatpush.bf16.msra.mxu2 %v531_v15 }
  0x19   :  { %480 = vmatmul.msk.bf16.gmra.mxu0 %vm97_vm0, %v520_v3  ;;  %485 = vmatmul.msk.bf16.gmra.mxu3 %vm97_vm0, %v525_v11 }
  0x1b   :  { %265 = vmatpush.bf16.msra.mxu1 %v530_v16  ;;  %545 = vmatpush.bf16.msra.mxu2 %v530_v16 }
  0x1f   :  { %266 = vmatpush.bf16.msra.mxu1 %v529_v17  ;;  %546 = vmatpush.bf16.msra.mxu2 %v529_v17 }
  0x29   :  { %481 = vmatmul.msk.bf16.gmra.mxu0 %vm97_vm0, %v521_v4  ;;  %486 = vmatmul.msk.bf16.gmra.mxu3 %vm97_vm0, %v526_v13 }
  0x39   :  { %482 = vmatmul.msk.bf16.gmra.mxu0 %vm97_vm0, %v522_v9 }
  0x49   :  { %483 = vmatmul.msk.bf16.gmra.mxu0 %vm97_vm0, %v523_v12  ;;  %v648_v12 = vld [vmem:[%s749_s4] ss:$0 sm:$0xff] }
  0x86   :  { %v131_v18 = vpop.f32.mrf.mxu0 }
  0x87   :  { %v132_v20 = vadd.f32 %v547_v19, %v131_v18 }
  0x89   :  { %v171_v23 = vmax.f32 %v132_v20, 0.0 }
  0x8c   :  { %v156_v48 = vpop.f32.mrf.mxu3 }
  0x8d   :  { %v157_v57 = vadd.f32 %v547_v19, %v156_v48 }
  0x8e   :  { %v133_v21 = vpop.f32.mrf.mxu0 }
  0x8f   :  { %v134_v22 = vadd.f32 %v547_v19, %v133_v21  ;;  %v181_v59 = vmax.f32 %v157_v57, 0.0 }
  0x91   :  { %v172_v24 = vmax.f32 %v134_v22, 0.0 }
  0x93   :  { %v187_v25 = vpack.c.bf16 %v172_v24, %v171_v23 }
  0x94   :  { %v158_v52 = vpop.f32.mrf.mxu3 }
  0x95   :  { %267 = vmatmul.bf16.vlgmr.msra.gmra.mxu1 %v187_v25  ;;  %v159_v58 = vadd.f32 %v547_v19, %v158_v52 }
  0x96   :  { %v136_v26 = vpop.f32.mrf.mxu0 }
  0x97   :  { %v137_v27 = vadd.f32 %v547_v19, %v136_v26  ;;  %v182_v60 = vmax.f32 %v159_v58, 0.0 }
  0x99   :  { %v173_v30 = vmax.f32 %v137_v27, 0.0  ;;  %v192_v61 = vpack.c.bf16 %v182_v60, %v181_v59 }
  0x9c   :  { %v161_v56 = vpop.f32.mrf.mxu3 }
  0x9d   :  { %v162_v63 = vadd.f32 %v547_v19, %v161_v56 }
  0x9e   :  { %v138_v28 = vpop.f32.mrf.mxu0 }
  0x9f   :  { %v139_v29 = vadd.f32 %v547_v19, %v138_v28  ;;  %v183_v2 = vmax.f32 %v162_v63, 0.0 }
  0xa1   :  { %v174_v31 = vmax.f32 %v139_v29, 0.0 }
  0xa3   :  { %v188_v32 = vpack.c.bf16 %v174_v31, %v173_v30 }
  0xa4   :  { %v163_v62 = vpop.f32.mrf.mxu3 }
  0xa5   :  { %272 = vmatmul.bf16.gmra.mxu1 %v188_v32  ;;  %v164_v0 = vadd.f32 %v547_v19, %v163_v62 }
  0xa6   :  { %v141_v33 = vpop.f32.mrf.mxu0 }
  0xa7   :  { %v142_v34 = vadd.f32 %v547_v19, %v141_v33  ;;  %v184_v3 = vmax.f32 %v164_v0, 0.0 }
  0xa9   :  { %v175_v37 = vmax.f32 %v142_v34, 0.0  ;;  %v193_v4 = vpack.c.bf16 %v184_v3, %v183_v2 }
  0xac   :  { %v166_v1 = vpop.f32.mrf.mxu3 }
  0xad   :  { %v167_v6 = vadd.f32 %v547_v19, %v166_v1 }
  0xae   :  { %v143_v35 = vpop.f32.mrf.mxu0 }
  0xaf   :  { %v144_v36 = vadd.f32 %v547_v19, %v143_v35  ;;  %v185_v8 = vmax.f32 %v167_v6, 0.0 }
  0xb1   :  { %v176_v38 = vmax.f32 %v144_v36, 0.0 }
  0xb3   :  { %v189_v39 = vpack.c.bf16 %v176_v38, %v175_v37 }
  0xb4   :  { %v168_v5 = vpop.f32.mrf.mxu3 }
  0xb5   :  { %277 = vmatmul.bf16.gmra.mxu1 %v189_v39  ;;  %v169_v7 = vadd.f32 %v547_v19, %v168_v5 }
  0xb6   :  { %v146_v40 = vpop.f32.mrf.mxu0 }
  0xb7   :  { %v147_v41 = vadd.f32 %v547_v19, %v146_v40  ;;  %v186_v9 = vmax.f32 %v169_v7, 0.0 }
  0xb9   :  { %v177_v44 = vmax.f32 %v147_v41, 0.0  ;;  %v194_v10 = vpack.c.bf16 %v186_v9, %v185_v8 }
  0xbe   :  { %v148_v42 = vpop.f32.mrf.mxu0 }
  0xbf   :  { %v149_v43 = vadd.f32 %v547_v19, %v148_v42 }
  0xc1   :  { %v178_v45 = vmax.f32 %v149_v43, 0.0 }
  0xc3   :  { %v190_v46 = vpack.c.bf16 %v178_v45, %v177_v44 }
  0xc5   :  { %282 = vmatmul.bf16.gmra.mxu1 %v190_v46 }
  0xc6   :  { %v151_v47 = vpop.f32.mrf.mxu0 }
  0xc7   :  { %v152_v49 = vadd.f32 %v547_v19, %v151_v47 }
  0xc9   :  { %v179_v53 = vmax.f32 %v152_v49, 0.0 }
  0xce   :  { %v153_v50 = vpop.f32.mrf.mxu0 }
  0xcf   :  { %v154_v51 = vadd.f32 %v547_v19, %v153_v50 }
  0xd1   :  { %v180_v54 = vmax.f32 %v154_v51, 0.0 }
  0xd3   :  { %v191_v55 = vpack.c.bf16 %v180_v54, %v179_v53 }
  0xd5   :  { %287 = vmatmul.bf16.vlgmr.msra.gmra.mxu2 %v191_v55 }
  0xe5   :  { %292 = vmatmul.bf16.gmra.mxu2 %v192_v61 }
  0xf5   :  { %297 = vmatmul.bf16.gmra.mxu2 %v193_v4 }
 0x105   :  { %302 = vmatmul.bf16.gmra.mxu2 %v194_v10 }
 0x112   :  { %v268_v11 = vpop.f32.mrf.mxu1 }
 0x113   :  { %312 = vst.msk [vmem:[#allocation2] sm:$0xff] %vm97_vm0, %v268_v11 }
 0x11a   :  { %v383_v13 = vld [vmem:[#allocation2] sm:$0xff]  ;;  %v270_v14 = vpop.f32.mrf.mxu1 }
 0x11b   :  { %v403_v15 = vadd.f32 %v648_v12, %v383_v13  ;;  %313 = vst.msk [vmem:[#allocation2 + $0x8] sm:$0xff] %vm97_vm0, %v270_v14 }
 0x11d   :  { %419 = vst.msk [vmem:[%s750_s5] sm:$0xff] %vm97_vm0, %v403_v15 }
 0x122   :  { %v384_v16 = vld [vmem:[#allocation2 + $0x8] sm:$0xff]  ;;  %v273_v17 = vpop.f32.mrf.mxu1 }
 0x123   :  { %v404_v18 = vadd.f32 %v648_v12, %v384_v16  ;;  %314 = vst.msk [vmem:[#allocation2 + $0x10] sm:$0xff] %vm97_vm0, %v273_v17 }
 0x125   :  { %420 = vst.msk [vmem:[%s750_s5 + $0x8] sm:$0xff] %vm97_vm0, %v404_v18 }
 0x12a   :  { %v385_v19 = vld [vmem:[#allocation2 + $0x10] sm:$0xff]  ;;  %v275_v20 = vpop.f32.mrf.mxu1 }
 0x12b   :  { %v405_v21 = vadd.f32 %v648_v12, %v385_v19  ;;  %315 = vst.msk [vmem:[#allocation2 + $0x18] sm:$0xff] %vm97_vm0, %v275_v20 }
 0x12d   :  { %421 = vst.msk [vmem:[%s750_s5 + $0x10] sm:$0xff] %vm97_vm0, %v405_v21 }
 0x132   :  { %v386_v22 = vld [vmem:[#allocation2 + $0x18] sm:$0xff]  ;;  %v278_v23 = vpop.f32.mrf.mxu1 }
 0x133   :  { %v406_v24 = vadd.f32 %v648_v12, %v386_v22  ;;  %316 = vst.msk [vmem:[#allocation2 + $0x20] sm:$0xff] %vm97_vm0, %v278_v23 }
 0x135   :  { %422 = vst.msk [vmem:[%s750_s5 + $0x18] sm:$0xff] %vm97_vm0, %v406_v24 }
 0x13a   :  { %v387_v25 = vld [vmem:[#allocation2 + $0x20] sm:$0xff]  ;;  %v280_v26 = vpop.f32.mrf.mxu1 }
 0x13b   :  { %v407_v27 = vadd.f32 %v648_v12, %v387_v25  ;;  %317 = vst.msk [vmem:[#allocation2 + $0x28] sm:$0xff] %vm97_vm0, %v280_v26 }
 0x13d   :  { %423 = vst.msk [vmem:[%s750_s5 + $0x20] sm:$0xff] %vm97_vm0, %v407_v27 }
 0x142   :  { %v388_v28 = vld [vmem:[#allocation2 + $0x28] sm:$0xff]  ;;  %v283_v29 = vpop.f32.mrf.mxu1 }
 0x143   :  { %v408_v30 = vadd.f32 %v648_v12, %v388_v28  ;;  %318 = vst.msk [vmem:[#allocation2 + $0x30] sm:$0xff] %vm97_vm0, %v283_v29 }
 0x145   :  { %424 = vst.msk [vmem:[%s750_s5 + $0x28] sm:$0xff] %vm97_vm0, %v408_v30 }
 0x14a   :  { %v389_v31 = vld [vmem:[#allocation2 + $0x30] sm:$0xff]  ;;  %v285_v32 = vpop.f32.mrf.mxu1 }
 0x14b   :  { %v409_v33 = vadd.f32 %v648_v12, %v389_v31  ;;  %319 = vst.msk [vmem:[#allocation2 + $0x38] sm:$0xff] %vm97_vm0, %v285_v32 }
 0x14d   :  { %425 = vst.msk [vmem:[%s750_s5 + $0x30] sm:$0xff] %vm97_vm0, %v409_v33 }
 0x152   :  { %v390_v34 = vld [vmem:[#allocation2 + $0x38] sm:$0xff] }
 0x153   :  { %v410_v35 = vadd.f32 %v648_v12, %v390_v34 }
 0x155   :  { %426 = vst.msk [vmem:[%s750_s5 + $0x38] sm:$0xff] %vm97_vm0, %v410_v35 }
 0x158   :  { %v288_v36 = vpop.f32.mrf.mxu2 }
 0x159   :  { %320 = vst.msk [vmem:[#allocation2 + $0x40] sm:$0xff] %vm97_vm0, %v288_v36 }
 0x160   :  { %v391_v37 = vld [vmem:[#allocation2 + $0x40] sm:$0xff]  ;;  %v290_v38 = vpop.f32.mrf.mxu2 }
 0x161   :  { %v411_v39 = vadd.f32 %v648_v12, %v391_v37  ;;  %321 = vst.msk [vmem:[#allocation2 + $0x48] sm:$0xff] %vm97_vm0, %v290_v38 }
 0x163   :  { %427 = vst.msk [vmem:[%s750_s5 + $0x40] sm:$0xff] %vm97_vm0, %v411_v39 }
 0x168   :  { %v392_v40 = vld [vmem:[#allocation2 + $0x48] sm:$0xff]  ;;  %v293_v41 = vpop.f32.mrf.mxu2 }
 0x169   :  { %v412_v42 = vadd.f32 %v648_v12, %v392_v40  ;;  %322 = vst.msk [vmem:[#allocation2 + $0x50] sm:$0xff] %vm97_vm0, %v293_v41 }
 0x16b   :  { %428 = vst.msk [vmem:[%s750_s5 + $0x48] sm:$0xff] %vm97_vm0, %v412_v42 }
 0x170   :  { %v393_v43 = vld [vmem:[#allocation2 + $0x50] sm:$0xff]  ;;  %v295_v44 = vpop.f32.mrf.mxu2 }
 0x171   :  { %v413_v45 = vadd.f32 %v648_v12, %v393_v43  ;;  %323 = vst.msk [vmem:[#allocation2 + $0x58] sm:$0xff] %vm97_vm0, %v295_v44 }
 0x173   :  { %429 = vst.msk [vmem:[%s750_s5 + $0x50] sm:$0xff] %vm97_vm0, %v413_v45 }
 0x178   :  { %v394_v46 = vld [vmem:[#allocation2 + $0x58] sm:$0xff]  ;;  %v298_v47 = vpop.f32.mrf.mxu2 }
 0x179   :  { %v414_v48 = vadd.f32 %v648_v12, %v394_v46  ;;  %324 = vst.msk [vmem:[#allocation2 + $0x60] sm:$0xff] %vm97_vm0, %v298_v47 }
 0x17b   :  { %430 = vst.msk [vmem:[%s750_s5 + $0x58] sm:$0xff] %vm97_vm0, %v414_v48 }
 0x180   :  { %v395_v49 = vld [vmem:[#allocation2 + $0x60] sm:$0xff]  ;;  %v300_v50 = vpop.f32.mrf.mxu2 }
 0x181   :  { %v415_v51 = vadd.f32 %v648_v12, %v395_v49  ;;  %325 = vst.msk [vmem:[#allocation2 + $0x68] sm:$0xff] %vm97_vm0, %v300_v50 }
 0x183   :  { %431 = vst.msk [vmem:[%s750_s5 + $0x60] sm:$0xff] %vm97_vm0, %v415_v51 }
 0x188   :  { %v396_v52 = vld [vmem:[#allocation2 + $0x68] sm:$0xff]  ;;  %v303_v53 = vpop.f32.mrf.mxu2 }
 0x189   :  { %v416_v54 = vadd.f32 %v648_v12, %v396_v52  ;;  %326 = vst.msk [vmem:[#allocation2 + $0x70] sm:$0xff] %vm97_vm0, %v303_v53 }
 0x18b   :  { %432 = vst.msk [vmem:[%s750_s5 + $0x68] sm:$0xff] %vm97_vm0, %v416_v54 }
 0x190   :  { %v397_v55 = vld [vmem:[#allocation2 + $0x70] sm:$0xff]  ;;  %v305_v56 = vpop.f32.mrf.mxu2 }
 0x191   :  { %v417_v57 = vadd.f32 %v648_v12, %v397_v55  ;;  %327 = vst.msk [vmem:[#allocation2 + $0x78] sm:$0xff] %vm97_vm0, %v305_v56 }
 0x193   :  { %433 = vst.msk [vmem:[%s750_s5 + $0x70] sm:$0xff] %vm97_vm0, %v417_v57 }
 0x198   :  { %v398_v58 = vld [vmem:[#allocation2 + $0x78] sm:$0xff] }
 0x199   :  { %v418_v59 = vadd.f32 %v648_v12, %v398_v58 }
 0x19b   :  { %434 = vst.msk [vmem:[%s750_s5 + $0x78] sm:$0xff] %vm97_vm0, %v418_v59 }

</bundles_post_ra>
